<compile_context>
chip_gen: v7x
topology: tpu7x:2x2x1
jax: 0.10.0
libtpu: 0.0.40
codegen_flags: <defaults>
</compile_context>

<pallas_src>
import functools
import jax
import jax.numpy as jnp
from jax import lax
from jax.experimental import pallas as pl
from jax.experimental.pallas import tpu as pltpu

LANE = 128


def _round_up(x, m):
    return (x + m - 1) // m * m


def _pad_last(x, target):
    pad = target - x.shape[-1]
    if pad == 0:
        return x
    return jnp.pad(x, [(0, 0)] * (x.ndim - 1) + [(0, pad)])


# ---------------------------------------------------------------------------
# Pallas kernels
# ---------------------------------------------------------------------------
def gemm_bias_relu_kernel(p_ref, w_ref, b_ref, o_ref):
    """out = relu( patches @ W_folded + bias )   (BN scale pre-folded into W)."""
    acc = jnp.dot(p_ref[...], w_ref[...], preferred_element_type=jnp.float32)
    o_ref[...] = jnp.maximum(acc + b_ref[...], 0.0).astype(o_ref.dtype)


def gemm_bias_residual_relu_kernel(p_ref, w_ref, b_ref, r_ref, o_ref):
    """out = relu( patches @ W_folded + bias + residual )   (identity shortcut)."""
    acc = jnp.dot(p_ref[...], w_ref[...], preferred_element_type=jnp.float32)
    acc = acc + b_ref[...] + r_ref[...].astype(jnp.float32)
    o_ref[...] = jnp.maximum(acc, 0.0).astype(o_ref.dtype)


def gemm_dual_bias_relu_kernel(p_ref, w_ref, b_ref, s_ref, ws_ref, o_ref):
    """out = relu( patches @ W2 + shortcut_in @ Wsc + bias )  (projection shortcut,
    fused as two MXU dots into one f32 accumulator -- no HBM concat needed)."""
    acc = jnp.dot(p_ref[...], w_ref[...], preferred_element_type=jnp.float32)
    acc = acc + jnp.dot(s_ref[...], ws_ref[...], preferred_element_type=jnp.float32)
    o_ref[...] = jnp.maximum(acc + b_ref[...], 0.0).astype(o_ref.dtype)


# ---------------------------------------------------------------------------
# Tiled GEMM driver
# ---------------------------------------------------------------------------
def _run_fused_gemm(patches, w, bias, residual=None, shortcut=None,
                    shortcut_w=None, out_dtype=jnp.float32):
    """Tiled  relu(patches @ w [+ shortcut @ shortcut_w] + bias [+ residual]).

    patches:    (M, K)       bf16
    w:          (K, Cout)    bf16   (Cout padded to a multiple of 128)
    bias:       (1, Cout)    f32
    residual:   (M, Cout)    bf16 or None   (identity shortcut)
    shortcut:   (M, Ks)      bf16 or None   (projection shortcut input)
    shortcut_w: (Ks, Cout)   bf16 or None
    """
    M, K = patches.shape
    Cout = w.shape[1]

    # Tile choice: 512 rows per step (~85% of HBM roofline per measurements);
    # tiny problems get a single full-size (16-aligned for bf16 packing) tile.
    tile_m = 512 if M >= 512 else _round_up(M, 16)
    m_pad = _round_up(M, tile_m)
    if m_pad != M:
        patches = jnp.pad(patches, ((0, m_pad - M), (0, 0)))
        if residual is not None:
            residual = jnp.pad(residual, ((0, m_pad - M), (0, 0)))
        if shortcut is not None:
            shortcut = jnp.pad(shortcut, ((0, m_pad - M), (0, 0)))

    grid = (m_pad // tile_m,)

    in_specs = [
        pl.BlockSpec((tile_m, K), lambda i: (i, 0)),   # patch tile, streamed
        pl.BlockSpec((K, Cout), lambda i: (0, 0)),     # weights, resident
        pl.BlockSpec((1, Cout), lambda i: (0, 0)),     # bias, resident
    ]
    args = [patches, w, bias]
    flops = 2 * m_pad * K * Cout

    if shortcut is not None:
        Ks = shortcut.shape[1]
        in_specs += [
            pl.BlockSpec((tile_m, Ks), lambda i: (i, 0)),   # shortcut tile
            pl.BlockSpec((Ks, Cout), lambda i: (0, 0)),     # shortcut weights
        ]
        args += [shortcut, shortcut_w]
        kernel = gemm_dual_bias_relu_kernel
        flops += 2 * m_pad * Ks * Cout
    elif residual is not None:
        in_specs.append(pl.BlockSpec((tile_m, Cout), lambda i: (i, 0)))
        args.append(residual)
        kernel = gemm_bias_residual_relu_kernel
    else:
        kernel = gemm_bias_relu_kernel

    out_itemsize = jnp.dtype(out_dtype).itemsize
    bytes_accessed = int(sum(a.size * a.dtype.itemsize for a in args)
                         + m_pad * Cout * out_itemsize)

    out = pl.pallas_call(
        kernel,
        out_shape=jax.ShapeDtypeStruct((m_pad, Cout), out_dtype),
        grid=grid,
        in_specs=in_specs,
        out_specs=pl.BlockSpec((tile_m, Cout), lambda i: (i, 0)),
        compiler_params=pltpu.CompilerParams(
            dimension_semantics=("parallel",)),
        cost_estimate=pl.CostEstimate(
            flops=flops, transcendentals=0, bytes_accessed=bytes_accessed),
    )(*args)
    return out[:M]


# ---------------------------------------------------------------------------
# JAX glue: im2col, weight reshaping, BN folding
# ---------------------------------------------------------------------------
def im2col(x_nhwc, k, stride, padding):
    """Returns (N*Ho*Wo, k*k*C) patch matrix; col order = (kh, kw, cin)."""
    N, H, W, C = x_nhwc.shape
    xp = jnp.pad(x_nhwc, ((0, 0), (padding, padding), (padding, padding), (0, 0)))
    Ho = (H + 2 * padding - k) // stride + 1
    Wo = (W + 2 * padding - k) // stride + 1
    taps = []
    for kh in range(k):
        for kw in range(k):
            taps.append(xp[:, kh:kh + stride * Ho:stride, kw:kw + stride * Wo:stride, :])
    p = jnp.concatenate(taps, axis=-1)                # (N, Ho, Wo, k*k*C)
    return p.reshape(N * Ho * Wo, k * k * C), Ho, Wo


def weight_oihw_to_2d(w_oihw):
    """(Cout, Cin, kh, kw) -> (kh*kw*Cin, Cout) matching im2col column order."""
    Cout, Cin, kh, kw = w_oihw.shape
    return jnp.transpose(w_oihw, (2, 3, 1, 0)).reshape(kh * kw * Cin, Cout)


def fold_bn(gamma, beta, mean, var, eps=1e-5):
    """Eval-mode BN as per-channel scale/shift, shaped (1, C)."""
    scale = gamma / jnp.sqrt(var + eps)
    bias = beta - mean * scale
    return scale[None, :], bias[None, :]


def basic_block_forward(x_nchw, params, stride):
    """Pallas implementation of BasicBlock.forward. x is NCHW (PyTorch convention)."""
    N, Cin, H, W = x_nchw.shape
    planes = params["conv1_w"].shape[0]
    cpad = _round_up(planes, LANE)

    x_bf = jnp.transpose(x_nchw, (0, 2, 3, 1)).astype(jnp.bfloat16)   # NHWC bf16

    # ---- conv1 (3x3, stride) + bn1 + relu : tiled GEMM kernel ---------------
    p1, Ho, Wo = im2col(x_bf, k=3, stride=stride, padding=1)          # bf16
    s1, b1 = fold_bn(params["bn1_gamma"], params["bn1_beta"],
                     params["bn1_mean"], params["bn1_var"])
    w1 = _pad_last(weight_oihw_to_2d(params["conv1_w"]) * s1, cpad).astype(jnp.bfloat16)
    b1p = _pad_last(b1, cpad)
    out1_pad = _run_fused_gemm(p1, w1, b1p, out_dtype=jnp.bfloat16)   # (M, cpad)
    out1 = out1_pad[:, :planes].reshape(N, Ho, Wo, planes)            # bf16

    # ---- conv2 (3x3, s=1) + bn2 + shortcut + add + relu : tiled GEMM --------
    p2, _, _ = im2col(out1, k=3, stride=1, padding=1)                 # bf16
    s2, b2 = fold_bn(params["bn2_gamma"], params["bn2_beta"],
                     params["bn2_mean"], params["bn2_var"])
    w2 = weight_oihw_to_2d(params["conv2_w"]) * s2                    # (9*planes, planes)
    w2p = _pad_last(w2, cpad).astype(jnp.bfloat16)

    if stride != 1 or Cin != planes:
        # projection shortcut (1x1 conv stride s + BN): fused as a SECOND matmul
        # inside the same kernel invocation -- no HBM-side K-concatenation.
        sc_p = x_bf[:, ::stride, ::stride, :].reshape(N * Ho * Wo, Cin)
        sc_s, sc_b = fold_bn(params["sc_bn_gamma"], params["sc_bn_beta"],
                             params["sc_bn_mean"], params["sc_bn_var"])
        sc_w = _pad_last(weight_oihw_to_2d(params["sc_conv_w"]) * sc_s,
                         cpad).astype(jnp.bfloat16)                   # (Cin, cpad)
        b_cat = _pad_last(b2 + sc_b, cpad)
        out_pad = _run_fused_gemm(p2, w2p, b_cat,
                                  shortcut=sc_p, shortcut_w=sc_w,
                                  out_dtype=jnp.float32)
    else:
        # identity shortcut: bf16 residual add in the epilogue (no eye() matmul)
        res = _pad_last(x_bf.reshape(N * Ho * Wo, Cin), cpad)         # bf16 residual
        b2p = _pad_last(b2, cpad)
        out_pad = _run_fused_gemm(p2, w2p, b2p, residual=res,
                                  out_dtype=jnp.float32)

    out = out_pad[:, :planes].reshape(N, Ho, Wo, planes)
    return jnp.transpose(out, (0, 3, 1, 2))                           # back to NCHW


# ---------------------------------------------------------------------------
# Pure-JAX reference (for correctness check)
# ---------------------------------------------------------------------------
def basic_block_reference(x_nchw, params, stride):
    def conv(x, w, s):
        return lax.conv_general_dilated(
            x, w, window_strides=(s, s),
            padding=[((w.shape[2] - 1) // 2,) * 2, ((w.shape[3] - 1) // 2,) * 2],
            dimension_numbers=("NCHW", "OIHW", "NCHW"))

    def bn(x, g, b, m, v, eps=1e-5):
        return ((x - m[None, :, None, None]) / jnp.sqrt(v[None, :, None, None] + eps)
                * g[None, :, None, None] + b[None, :, None, None])

    out = jax.nn.relu(bn(conv(x_nchw, params["conv1_w"], stride),
                         params["bn1_gamma"], params["bn1_beta"],
                         params["bn1_mean"], params["bn1_var"]))
    out = bn(conv(out, params["conv2_w"], 1),
             params["bn2_gamma"], params["bn2_beta"],
             params["bn2_mean"], params["bn2_var"])
    Cin, planes = x_nchw.shape[1], params["conv1_w"].shape[0]
    if stride != 1 or Cin != planes:
        sc = bn(conv(x_nchw, params["sc_conv_w"], stride),
                params["sc_bn_gamma"], params["sc_bn_beta"],
                params["sc_bn_mean"], params["sc_bn_var"])
    else:
        sc = x_nchw
    return jax.nn.relu(out + sc)


# ---------------------------------------------------------------------------
# Deterministic parameter init + driver
# ---------------------------------------------------------------------------
def make_params(key, in_planes, planes, stride):
    ks = jax.random.split(key, 12)
    params = {
        "conv1_w": 0.1 * jax.random.normal(ks[0], (planes, in_planes, 3, 3), jnp.float32),
        "bn1_gamma": 1.0 + 0.1 * jax.random.normal(ks[1], (planes,), jnp.float32),
        "bn1_beta": 0.1 * jax.random.normal(ks[2], (planes,), jnp.float32),
        "bn1_mean": 0.1 * jax.random.normal(ks[3], (planes,), jnp.float32),
        "bn1_var": jax.random.uniform(ks[4], (planes,), jnp.float32, 0.5, 1.5),
        "conv2_w": 0.1 * jax.random.normal(ks[5], (planes, planes, 3, 3), jnp.float32),
        "bn2_gamma": 1.0 + 0.1 * jax.random.normal(ks[6], (planes,), jnp.float32),
        "bn2_beta": 0.1 * jax.random.normal(ks[7], (planes,), jnp.float32),
        "bn2_mean": 0.1 * jax.random.normal(ks[8], (planes,), jnp.float32),
        "bn2_var": jax.random.uniform(ks[9], (planes,), jnp.float32, 0.5, 1.5),
    }
    if stride != 1 or in_planes != planes:
        ks2 = jax.random.split(ks[10], 5)
        params.update({
            "sc_conv_w": 0.1 * jax.random.normal(ks2[0], (planes, in_planes, 1, 1), jnp.float32),
            "sc_bn_gamma": 1.0 + 0.1 * jax.random.normal(ks2[1], (planes,), jnp.float32),
            "sc_bn_beta": 0.1 * jax.random.normal(ks2[2], (planes,), jnp.float32),
            "sc_bn_mean": 0.1 * jax.random.normal(ks2[3], (planes,), jnp.float32),
            "sc_bn_var": jax.random.uniform(ks2[4], (planes,), jnp.float32, 0.5, 1.5),
        })
    return params


if __name__ == "__main__":
    key = jax.random.PRNGKey(0)
    k_x, k_p = jax.random.split(key)

    # projection-shortcut variant: batch=2, in_planes=4, planes=8, 16x16, stride=2
    N, Cin, H, W = 2, 4, 16, 16
    planes, stride = 8, 2

    x = jax.random.normal(k_x, (N, Cin, H, W), jnp.float32)
    params = make_params(k_p, Cin, planes, stride)

    fwd = jax.jit(functools.partial(basic_block_forward, stride=stride))
    out = jax.block_until_ready(fwd(x, params))

    ref = basic_block_reference(x, params, stride)
    assert out.shape == ref.shape == (N, planes, H // stride, W // stride)
    # bf16 MXU operands -> loosened tolerance vs the f32 reference
    assert jnp.allclose(out, ref, atol=5e-2, rtol=5e-2), \
        f"max abs err {jnp.max(jnp.abs(out - ref))}"

    # identity-shortcut variant (stride=1, in_planes == planes)
    params_id = make_params(k_p, planes, planes, 1)
    x_id = jax.random.normal(k_x, (N, planes, H, W), jnp.float32)
    fwd_id = jax.jit(functools.partial(basic_block_forward, stride=1))
    out_id = jax.block_until_ready(fwd_id(x_id, params_id))
    ref_id = basic_block_reference(x_id, params_id, 1)
    assert jnp.allclose(out_id, ref_id, atol=5e-2, rtol=5e-2), \
        f"max abs err {jnp.max(jnp.abs(out_id - ref_id))}"

    print("KERNEL_OK")
</pallas_src>

<mosaic_0001>
module attributes {stable_mosaic.version = 11 : i64} {
  func.func @gemm_bias_relu_kernel(%arg0: i32, %arg1: memref<128x36xbf16, #tpu.memory_space<vmem>>, %arg2: memref<36x128xbf16, #tpu.memory_space<vmem>>, %arg3: memref<1x128xf32, #tpu.memory_space<vmem>>, %arg4: memref<128x128xbf16, #tpu.memory_space<vmem>>) attributes {dimension_semantics = [#tpu.dimension_semantics<parallel>], iteration_bounds = array<i64: 1>, scalar_prefetch = 0 : i64, scratch_operands = 0 : i64, tpu.core_type = #tpu.core_type<tc>, window_params = [{transform_indices = @transform_0, window_bounds = array<i64: 128, 36>}, {pipeline_mode = #tpu.pipeline_mode<synchronous>, transform_indices = @transform_1, window_bounds = array<i64: 36, 128>}, {pipeline_mode = #tpu.pipeline_mode<synchronous>, transform_indices = @transform_2, window_bounds = array<i64: 1, 128>}, {transform_indices = @transform_3, window_bounds = array<i64: 128, 128>}]} {
    %c0 = arith.constant 0 : index
    %c0_0 = arith.constant 0 : index
    %0 = vector.load %arg1[%c0, %c0_0] : memref<128x36xbf16, #tpu.memory_space<vmem>>, vector<128x36xbf16>
    %c0_1 = arith.constant 0 : index
    %c0_2 = arith.constant 0 : index
    %1 = vector.load %arg2[%c0_1, %c0_2] : memref<36x128xbf16, #tpu.memory_space<vmem>>, vector<36x128xbf16>
    %cst = arith.constant dense<0.000000e+00> : vector<128x128xf32>
    %2 = tpu.matmul %0, %1, %cst {dimension_numbers = #tpu.dot_dimension_numbers<[1], [0], [0], [1], [0, 0, 1, 1], [], []>} : vector<128x36xbf16>, vector<36x128xbf16>, vector<128x128xf32> -> vector<128x128xf32>
    %c0_3 = arith.constant 0 : index
    %c0_4 = arith.constant 0 : index
    %3 = vector.load %arg3[%c0_3, %c0_4] : memref<1x128xf32, #tpu.memory_space<vmem>>, vector<1x128xf32>
    %4 = vector.broadcast %3 : vector<1x128xf32> to vector<128x128xf32>
    %5 = arith.addf %2, %4 : vector<128x128xf32>
    %cst_5 = arith.constant 0.000000e+00 : f32
    %6 = vector.broadcast %cst_5 : f32 to vector<128x128xf32>
    %7 = arith.maximumf %5, %6 : vector<128x128xf32>
    %8 = arith.truncf %7 : vector<128x128xf32> to vector<128x128xbf16>
    %c0_6 = arith.constant 0 : index
    %c0_7 = arith.constant 0 : index
    %9 = vector.load %arg4[%c0_6, %c0_7] : memref<128x128xbf16, #tpu.memory_space<vmem>>, vector<128x128xbf16>
    tpu.vector_store %arg4[%c0_6, %c0_7], %8 {strides = array<i32>} : memref<128x128xbf16, #tpu.memory_space<vmem>>, vector<128x128xbf16>,
    return
  }
  func.func @transform_0(%arg0: i32) -> (i32, i32) {
    %c0_i32 = arith.constant 0 : i32
    %c0_i32_0 = arith.constant 0 : i32
    return %arg0, %c0_i32 : i32, i32
  }
  func.func @transform_1(%arg0: i32) -> (i32, i32) {
    %c0_i32 = arith.constant 0 : i32
    %c0_i32_0 = arith.constant 0 : i32
    %c0_i32_1 = arith.constant 0 : i32
    return %c0_i32, %c0_i32_0 : i32, i32
  }
  func.func @transform_2(%arg0: i32) -> (i32, i32) {
    %c0_i32 = arith.constant 0 : i32
    %c0_i32_0 = arith.constant 0 : i32
    %c0_i32_1 = arith.constant 0 : i32
    return %c0_i32, %c0_i32_0 : i32, i32
  }
  func.func @transform_3(%arg0: i32) -> (i32, i32) {
    %c0_i32 = arith.constant 0 : i32
    %c0_i32_0 = arith.constant 0 : i32
    return %arg0, %c0_i32 : i32, i32
  }
}

module attributes {stable_mosaic.version = 11 : i64} {
  func.func @gemm_dual_bias_relu_kernel(%arg0: i32, %arg1: memref<128x72xbf16, #tpu.memory_space<vmem>>, %arg2: memref<72x128xbf16, #tpu.memory_space<vmem>>, %arg3: memref<1x128xf32, #tpu.memory_space<vmem>>, %arg4: memref<128x4xbf16, #tpu.memory_space<vmem>>, %arg5: memref<4x128xbf16, #tpu.memory_space<vmem>>, %arg6: memref<128x128xf32, #tpu.memory_space<vmem>>) attributes {dimension_semantics = [#tpu.dimension_semantics<parallel>], iteration_bounds = array<i64: 1>, scalar_prefetch = 0 : i64, scratch_operands = 0 : i64, tpu.core_type = #tpu.core_type<tc>, window_params = [{transform_indices = @transform_0, window_bounds = array<i64: 128, 72>}, {pipeline_mode = #tpu.pipeline_mode<synchronous>, transform_indices = @transform_1, window_bounds = array<i64: 72, 128>}, {pipeline_mode = #tpu.pipeline_mode<synchronous>, transform_indices = @transform_2, window_bounds = array<i64: 1, 128>}, {transform_indices = @transform_3, window_bounds = array<i64: 128, 4>}, {pipeline_mode = #tpu.pipeline_mode<synchronous>, transform_indices = @transform_4, window_bounds = array<i64: 4, 128>}, {transform_indices = @transform_5, window_bounds = array<i64: 128, 128>}]} {
    %c0 = arith.constant 0 : index
    %c0_0 = arith.constant 0 : index
    %0 = vector.load %arg1[%c0, %c0_0] : memref<128x72xbf16, #tpu.memory_space<vmem>>, vector<128x72xbf16>
    %c0_1 = arith.constant 0 : index
    %c0_2 = arith.constant 0 : index
    %1 = vector.load %arg2[%c0_1, %c0_2] : memref<72x128xbf16, #tpu.memory_space<vmem>>, vector<72x128xbf16>
    %cst = arith.constant dense<0.000000e+00> : vector<128x128xf32>
    %2 = tpu.matmul %0, %1, %cst {dimension_numbers = #tpu.dot_dimension_numbers<[1], [0], [0], [1], [0, 0, 1, 1], [], []>} : vector<128x72xbf16>, vector<72x128xbf16>, vector<128x128xf32> -> vector<128x128xf32>
    %c0_3 = arith.constant 0 : index
    %c0_4 = arith.constant 0 : index
    %3 = vector.load %arg4[%c0_3, %c0_4] : memref<128x4xbf16, #tpu.memory_space<vmem>>, vector<128x4xbf16>
    %c0_5 = arith.constant 0 : index
    %c0_6 = arith.constant 0 : index
    %4 = vector.load %arg5[%c0_5, %c0_6] : memref<4x128xbf16, #tpu.memory_space<vmem>>, vector<4x128xbf16>
    %cst_7 = arith.constant dense<0.000000e+00> : vector<128x128xf32>
    %5 = tpu.matmul %3, %4, %cst_7 {dimension_numbers = #tpu.dot_dimension_numbers<[1], [0], [0], [1], [0, 0, 1, 1], [], []>} : vector<128x4xbf16>, vector<4x128xbf16>, vector<128x128xf32> -> vector<128x128xf32>
    %6 = arith.addf %2, %5 : vector<128x128xf32>
    %c0_8 = arith.constant 0 : index
    %c0_9 = arith.constant 0 : index
    %7 = vector.load %arg3[%c0_8, %c0_9] : memref<1x128xf32, #tpu.memory_space<vmem>>, vector<1x128xf32>
    %8 = vector.broadcast %7 : vector<1x128xf32> to vector<128x128xf32>
    %9 = arith.addf %6, %8 : vector<128x128xf32>
    %cst_10 = arith.constant 0.000000e+00 : f32
    %10 = vector.broadcast %cst_10 : f32 to vector<128x128xf32>
    %11 = arith.maximumf %9, %10 : vector<128x128xf32>
    %c0_11 = arith.constant 0 : index
    %c0_12 = arith.constant 0 : index
    %12 = vector.load %arg6[%c0_11, %c0_12] : memref<128x128xf32, #tpu.memory_space<vmem>>, vector<128x128xf32>
    tpu.vector_store %arg6[%c0_11, %c0_12], %11 {strides = array<i32>} : memref<128x128xf32, #tpu.memory_space<vmem>>, vector<128x128xf32>,
    return
  }
  func.func @transform_0(%arg0: i32) -> (i32, i32) {
    %c0_i32 = arith.constant 0 : i32
    %c0_i32_0 = arith.constant 0 : i32
    return %arg0, %c0_i32 : i32, i32
  }
  func.func @transform_1(%arg0: i32) -> (i32, i32) {
    %c0_i32 = arith.constant 0 : i32
    %c0_i32_0 = arith.constant 0 : i32
    %c0_i32_1 = arith.constant 0 : i32
    return %c0_i32, %c0_i32_0 : i32, i32
  }
  func.func @transform_2(%arg0: i32) -> (i32, i32) {
    %c0_i32 = arith.constant 0 : i32
    %c0_i32_0 = arith.constant 0 : i32
    %c0_i32_1 = arith.constant 0 : i32
    return %c0_i32, %c0_i32_0 : i32, i32
  }
  func.func @transform_3(%arg0: i32) -> (i32, i32) {
    %c0_i32 = arith.constant 0 : i32
    %c0_i32_0 = arith.constant 0 : i32
    return %arg0, %c0_i32 : i32, i32
  }
  func.func @transform_4(%arg0: i32) -> (i32, i32) {
    %c0_i32 = arith.constant 0 : i32
    %c0_i32_0 = arith.constant 0 : i32
    %c0_i32_1 = arith.constant 0 : i32
    return %c0_i32, %c0_i32_0 : i32, i32
  }
  func.func @transform_5(%arg0: i32) -> (i32, i32) {
    %c0_i32 = arith.constant 0 : i32
    %c0_i32_0 = arith.constant 0 : i32
    return %arg0, %c0_i32 : i32, i32
  }
}

</mosaic_0001>

<bundles_post_ra>
// kernel: basic_block_forward.2
= control target key start
LH: loop header
LB: loop body
LE: loop exit
PB: predicated region body
PF: predicated region fallthrough
CT: control target
= control target key end

     0   :  { %vm98_vm0 = vcmask 293888   ;;  %vm123_vm1 = vcmask 1041408   ;;  %s563_s1 = inlined_call_operand.vmem [shape: bf16[36,128], index: 1, kind: input, shape index: {}]   ;;  %s564_s0 = inlined_call_operand.vmem [shape: bf16[128,36], index: 0, kind: input, shape index: {}]   ;;  %s565_s2 = inlined_call_operand.vmem [shape: f32[1,128], index: 2, kind: input, shape index: {}]   ;;  %s566_s3 = inlined_call_operand.vmem [shape: bf16[128,128], index: 3, kind: output, shape index: {}]  }
   0x1   :  { %v464_v0 = vld [vmem:[%s563_s1] sm:$0xff]   ;;  %v465_v1 = vld [vmem:[%s563_s1 + $0x8] sm:$0xff]   ;;  %v466_v2 = vld [vmem:[%s563_s1 + $0x10] ss:$0 sps:$4 sm:$0x33]  }
   0x2   :  { %434 = vmatprep.subr.bf16.mxu0 %v464_v0  ;;  %456 = vmatprep.subr.bf16.mxu1 %v464_v0  ;;  %v467_v3 = vld [vmem:[%s564_s0] sm:$0xff]   ;;  %v125_v5 = vsel %vm123_vm1, %v466_v2, 0  ;;  %v469_v6 = vld [vmem:[%s564_s0 + $0x8] sm:$0xff]   ;;  %v471_v8 = vld [vmem:[%s564_s0 + $0x10] sm:$0xff]  }
   0x3   :  { %435 = vmatpush3.bf16.msra.mxu0 %v464_v0  ;;  %459 = vmatpush3.bf16.msra.mxu1 %v464_v0  ;;  %v468_v4 = vld [vmem:[%s564_s0 + $0x20] sm:$0xff]   ;;  %v470_v7 = vld [vmem:[%s564_s0 + $0x28] sm:$0xff]   ;;  %v472_v9 = vld [vmem:[%s564_s0 + $0x30] sm:$0xff]  }
   0x4   :  { %436 = vmatprep.subr.bf16.mxu0 %v465_v1  ;;  %457 = vmatprep.subr.bf16.mxu1 %v465_v1  ;;  %v473_v10 = vld [vmem:[%s564_s0 + $0x18] sm:$0xff]   ;;  %v324_v12 = vld [vmem:[%s565_s2] ss:$0 sm:$0xff] }
   0x5   :  { %440 = vmatprep.mubr.msk.bf16.mxu0 %vm98_vm0, %v467_v3  ;;  %448 = vmatprep.mubr.msk.bf16.mxu1 %vm98_vm0, %v468_v4  ;;  %v474_v11 = vld [vmem:[%s564_s0 + $0x38] sm:$0xff]  }
   0x7   :  { %437 = vmatpush3.bf16.msra.mxu0 %v465_v1  ;;  %460 = vmatpush3.bf16.msra.mxu1 %v465_v1 }
   0x8   :  { %462 = vmatprep.subr.msk.bf16.mxu0 %vm123_vm1, %v466_v2  ;;  %463 = vmatprep.subr.msk.bf16.mxu1 %vm123_vm1, %v466_v2 }
   0xb   :  { %439 = vmatpush3.bf16.msra.mxu0 %v125_v5  ;;  %461 = vmatpush3.bf16.msra.mxu1 %v125_v5 }
   0xe   :  { %441 = vmatmul.mubr.msk.bf16.vlgmr.msra.gmra.mrb[0].mxu0 %vm98_vm0, %v469_v6  ;;  %449 = vmatmul.mubr.msk.bf16.vlgmr.msra.gmra.mrb[0].mxu1 %vm98_vm0, %v470_v7 }
   0xf   :  { %444 = vmatprep.mubr.msk.bf16.mxu0 %vm98_vm0, %v471_v8  ;;  %452 = vmatprep.mubr.msk.bf16.mxu1 %vm98_vm0, %v472_v9 }
  0x16   :  { %445 = vmatmul.mubr.msk.bf16.gmra.mrb[4].mxu0 %vm98_vm0, %v473_v10  ;;  %453 = vmatmul.mubr.msk.bf16.gmra.mrb[4].mxu1 %vm98_vm0, %v474_v11 }
  0xe1   :  { %v442_v13 = vpop.f32.mrb[0].mxu0  ;;  %v450_v14 = vpop.f32.mrb[0].mxu1 }
  0xe2   :  { %v170_v15 = vadd.f32 %v442_v13, %v324_v12  ;;  %v202_v16 = vadd.f32 %v450_v14, %v324_v12  ;;  %v161_v17 = vpop.f32.mrb[1].mxu0  ;;  %v193_v18 = vpop.f32.mrb[1].mxu1 }
  0xe3   :  { %v162_v19 = vadd.f32 %v324_v12, %v161_v17  ;;  %v194_v20 = vadd.f32 %v324_v12, %v193_v18  ;;  %v443_v21 = vpop.f32.mrb[2].mxu0  ;;  %v451_v22 = vpop.f32.mrb[2].mxu1 }
  0xe4   :  { %v173_v23 = vadd.f32 %v443_v21, %v324_v12  ;;  %v205_v24 = vadd.f32 %v451_v22, %v324_v12  ;;  %v164_v25 = vpop.f32.mrb[3].mxu0  ;;  %v196_v26 = vpop.f32.mrb[3].mxu1  ;;  %v226_v29 = vmax.f32 %v170_v15, 0.0  ;;  %v234_v30 = vmax.f32 %v202_v16, 0.0 }
  0xe5   :  { %v165_v27 = vadd.f32 %v324_v12, %v164_v25  ;;  %v197_v28 = vadd.f32 %v324_v12, %v196_v26  ;;  %v224_v33 = vmax.f32 %v162_v19, 0.0  ;;  %v232_v34 = vmax.f32 %v194_v20, 0.0 }
  0xe6   :  { %v227_v31 = vmax.f32 %v173_v23, 0.0  ;;  %v235_v32 = vmax.f32 %v205_v24, 0.0 }
  0xe7   :  { %v225_v35 = vmax.f32 %v165_v27, 0.0  ;;  %v233_v36 = vmax.f32 %v197_v28, 0.0 }
  0xe8   :  { %v384_v37 = vpack.c.bf16 %v227_v31, %v226_v29  ;;  %v404_v38 = vpack.c.bf16 %v235_v32, %v234_v30 }
  0xe9   :  { %v379_v39 = vpack.c.bf16 %v225_v35, %v224_v33  ;;  %v399_v40 = vpack.c.bf16 %v233_v36, %v232_v34  ;;  %v446_v41 = vpop.f32.mrb[4].mxu0  ;;  %v454_v42 = vpop.f32.mrb[4].mxu1 }
  0xea   :  { %416 = vst [vmem:[%s566_s3 + $0x8] sm:$0xff] %v384_v37   ;;  %420 = vst [vmem:[%s566_s3 + $0x28] sm:$0xff] %v404_v38   ;;  %v186_v43 = vadd.f32 %v446_v41, %v324_v12  ;;  %v218_v44 = vadd.f32 %v454_v42, %v324_v12  ;;  %v177_v45 = vpop.f32.mrb[5].mxu0  ;;  %v209_v46 = vpop.f32.mrb[5].mxu1 }
  0xeb   :  { %380 = vst [vmem:[%s566_s3] sm:$0xff] %v379_v39   ;;  %419 = vst [vmem:[%s566_s3 + $0x20] sm:$0xff] %v399_v40   ;;  %v178_v47 = vadd.f32 %v324_v12, %v177_v45  ;;  %v210_v48 = vadd.f32 %v324_v12, %v209_v46  ;;  %v447_v49 = vpop.f32.mrb[6].mxu0  ;;  %v455_v50 = vpop.f32.mrb[6].mxu1 }
  0xec   :  { %v189_v51 = vadd.f32 %v447_v49, %v324_v12  ;;  %v221_v52 = vadd.f32 %v455_v50, %v324_v12  ;;  %v180_v53 = vpop.f32.mrb[7].mxu0  ;;  %v212_v54 = vpop.f32.mrb[7].mxu1  ;;  %v230_v57 = vmax.f32 %v186_v43, 0.0  ;;  %v238_v58 = vmax.f32 %v218_v44, 0.0 }
  0xed   :  { %v181_v55 = vadd.f32 %v324_v12, %v180_v53  ;;  %v213_v56 = vadd.f32 %v324_v12, %v212_v54  ;;  %v228_v61 = vmax.f32 %v178_v47, 0.0  ;;  %v236_v62 = vmax.f32 %v210_v48, 0.0 }
  0xee   :  { %v231_v59 = vmax.f32 %v189_v51, 0.0  ;;  %v239_v60 = vmax.f32 %v221_v52, 0.0 }
  0xef   :  { %v229_v63 = vmax.f32 %v181_v55, 0.0  ;;  %v237_v0 = vmax.f32 %v213_v56, 0.0 }
  0xf0   :  { %v394_v1 = vpack.c.bf16 %v231_v59, %v230_v57  ;;  %v414_v2 = vpack.c.bf16 %v239_v60, %v238_v58 }
  0xf1   :  { %v389_v3 = vpack.c.bf16 %v229_v63, %v228_v61  ;;  %v409_v4 = vpack.c.bf16 %v237_v0, %v236_v62 }
  0xf2   :  { %418 = vst [vmem:[%s566_s3 + $0x18] sm:$0xff] %v394_v1   ;;  %422 = vst [vmem:[%s566_s3 + $0x38] sm:$0xff] %v414_v2  }
  0xf3   :  { %417 = vst [vmem:[%s566_s3 + $0x10] sm:$0xff] %v389_v3   ;;  %421 = vst [vmem:[%s566_s3 + $0x30] sm:$0xff] %v409_v4  }

// kernel: basic_block_forward.3
= control target key start
LH: loop header
LB: loop body
LE: loop exit
PB: predicated region body
PF: predicated region fallthrough
CT: control target
= control target key end

     0   :  { %vm128_vm0 = vcmask 1041408   ;;  %vm103_vm1 = vcmask 31744   ;;  %vm296_vm2 = vcmask 588800   ;;  %vm321_vm3 = vcmask 1043456   ;;  %s816_s4 = inlined_call_operand.vmem [shape: bf16[4,128], index: 4, kind: input, shape index: {}]   ;;  %s817_s1 = inlined_call_operand.vmem [shape: bf16[72,128], index: 1, kind: input, shape index: {}]   ;;  %s818_s3 = inlined_call_operand.vmem [shape: bf16[128,4], index: 3, kind: input, shape index: {}]   ;;  %s819_s0 = inlined_call_operand.vmem [shape: bf16[128,72], index: 0, kind: input, shape index: {}]   ;;  %s820_s2 = inlined_call_operand.vmem [shape: f32[1,128], index: 2, kind: input, shape index: {}]   ;;  %s821_s5 = inlined_call_operand.vmem [shape: f32[128,128], index: 5, kind: output, shape index: {}]  }
   0x1   :  { %v62_v0 = vld [vmem:[%s816_s4] sm:$0x3]  ;;  %v616_v4 = vld [vmem:[%s818_s3 + $0x8] sm:$0xff]   ;;  %v618_v6 = vld [vmem:[%s817_s1 + $0x10] sm:$0xff]  }
   0x2   :  { %611 = vmatprep.subr.msk.bf16.mxu0 %vm128_vm0, %v62_v0  ;;  %v130_v1 = vsel %vm128_vm0, %v62_v0, 0  ;;  %v614_v2 = vld [vmem:[%s817_s1] sm:$0xff]   ;;  %v617_v5 = vld [vmem:[%s817_s1 + $0x8] sm:$0xff]   ;;  %v619_v7 = vld [vmem:[%s818_s3 + $0x10] sm:$0xff]  }
   0x3   :  { %542 = vmatpush3.bf16.msra.mxu0 %v130_v1  ;;  %v615_v3 = vld [vmem:[%s818_s3] sm:$0xff]   ;;  %585 = vmatprep.subr.bf16.mxu1 %v614_v2  ;;  %v620_v8 = vld [vmem:[%s818_s3 + $0x18] sm:$0xff]   ;;  %v625_v11 = vld [vmem:[%s819_s0 + $0x10] sm:$0xff]  }
   0x4   :  { %559 = vmatprep.subr.bf16.mxu0 %v614_v2  ;;  %543 = vmatprep.mubr.msk.bf16.mxu0 %vm103_vm1, %v615_v3  ;;  %v621_v9 = vld [vmem:[%s817_s1 + $0x18] sm:$0xff]   ;;  %v623_v10 = vld [vmem:[%s818_s3 + $0x20] sm:$0xff]   ;;  %v624_v14 = vld [vmem:[%s818_s3 + $0x28] sm:$0xff]  }
   0x5   :  { %590 = vmatpush3.bf16.msra.mxu1 %v614_v2  ;;  %v622_v12 = vld [vmem:[%s817_s1 + $0x20] ss:$0 sps:$4 sm:$0xff]   ;;  %573 = vmatprep.mubr.msk.bf16.mxu1 %vm296_vm2, %v625_v11  ;;  %v627_v15 = vld [vmem:[%s818_s3 + $0x30] sm:$0xff]   ;;  %v626_v16 = vld [vmem:[%s819_s0 + $0x18] sm:$0xff]  }
   0x6   :  { %544 = vmatmul.mubr.msk.bf16.vlgmr.msra.gmra.mrb[0].mxu0 %vm103_vm1, %v616_v4  ;;  %586 = vmatprep.subr.bf16.mxu1 %v617_v5  ;;  %v323_v13 = vsel %vm321_vm3, %v622_v12, 0  ;;  %v629_v17 = vld [vmem:[%s819_s0 + $0x20] sm:$0xff]   ;;  %v628_v18 = vld [vmem:[%s818_s3 + $0x38] sm:$0xff]   ;;  %v630_v20 = vld [vmem:[%s819_s0 + $0x28] sm:$0xff]  }
   0x7   :  { %560 = vmatpush3.bf16.msra.mxu0 %v614_v2  ;;  %547 = vmatprep.mubr.msk.bf16.mxu0 %vm103_vm1, %v619_v7  ;;  %v631_v19 = vld [vmem:[%s819_s0] sm:$0xff]   ;;  %v633_v21 = vld [vmem:[%s819_s0 + $0x30] sm:$0xff]   ;;  %v632_v22 = vld [vmem:[%s819_s0 + $0x8] sm:$0xff]  }
   0x8   :  { %561 = vmatprep.subr.bf16.mxu0 %v617_v5  ;;  %v634_v23 = vld [vmem:[%s819_s0 + $0x38] sm:$0xff]   ;;  %v750_v31 = vld [vmem:[%s820_s2] ss:$0 sm:$0xff] }
   0x9   :  { %591 = vmatpush3.bf16.msra.mxu1 %v617_v5 }
   0xa   :  { %587 = vmatprep.subr.bf16.mxu1 %v618_v6 }
   0xb   :  { %562 = vmatpush3.bf16.msra.mxu0 %v617_v5 }
   0xc   :  { %563 = vmatprep.subr.bf16.mxu0 %v618_v6 }
   0xd   :  { %592 = vmatpush3.bf16.msra.mxu1 %v618_v6 }
   0xe   :  { %548 = vmatmul.mubr.msk.bf16.gmra.mrb[4].mxu0 %vm103_vm1, %v620_v8  ;;  %588 = vmatprep.subr.bf16.mxu1 %v621_v9 }
   0xf   :  { %551 = vmatprep.mubr.msk.bf16.mxu0 %vm103_vm1, %v623_v10  ;;  %564 = vmatpush3.bf16.msra.mxu0 %v618_v6 }
  0x10   :  { %565 = vmatprep.subr.bf16.mxu0 %v621_v9 }
  0x11   :  { %593 = vmatpush3.bf16.msra.mxu1 %v621_v9 }
  0x12   :  { %613 = vmatprep.subr.msk.bf16.mxu1 %vm321_vm3, %v622_v12 }
  0x13   :  { %566 = vmatpush3.bf16.msra.mxu0 %v621_v9 }
  0x14   :  { %612 = vmatprep.subr.msk.bf16.mxu0 %vm321_vm3, %v622_v12 }
  0x15   :  { %594 = vmatpush3.bf16.msra.mxu1 %v323_v13 }
  0x16   :  { %552 = vmatmul.mubr.msk.bf16.gmra.mrb[8].mxu0 %vm103_vm1, %v624_v14 }
  0x17   :  { %555 = vmatprep.mubr.msk.bf16.mxu0 %vm103_vm1, %v627_v15  ;;  %568 = vmatpush3.bf16.msra.mxu0 %v323_v13 }
  0x18   :  { %574 = vmatmul.mubr.msk.bf16.vlgmr.msra.gmra.mrb[0].mxu1 %vm296_vm2, %v626_v16 }
  0x19   :  { %577 = vmatprep.mubr.msk.bf16.mxu1 %vm296_vm2, %v629_v17 }
  0x1e   :  { %556 = vmatmul.mubr.msk.bf16.gmra.mrb[12].mxu0 %vm103_vm1, %v628_v18 }
  0x1f   :  { %569 = vmatprep.mubr.msk.bf16.mxu0 %vm296_vm2, %v631_v19 }
  0x20   :  { %578 = vmatmul.mubr.msk.bf16.gmra.mrb[4].mxu1 %vm296_vm2, %v630_v20 }
  0x21   :  { %581 = vmatprep.mubr.msk.bf16.mxu1 %vm296_vm2, %v633_v21 }
  0x26   :  { %570 = vmatmul.mubr.msk.bf16.vlgmr.msra.gmra.mrb[0].mxu0 %vm296_vm2, %v632_v22 }
  0x28   :  { %582 = vmatmul.mubr.msk.bf16.gmra.mrb[8].mxu1 %vm296_vm2, %v634_v23 }
  0xe1   :  { %v549_v24 = vpop.f32.mrb[4].mxu0 }
  0xe2   :  { %v182_v25 = vpop.f32.mrb[5].mxu0 }
  0xe3   :  { %v550_v26 = vpop.f32.mrb[6].mxu0 }
  0xe4   :  { %v185_v27 = vpop.f32.mrb[7].mxu0 }
  0xe9   :  { %v553_v28 = vpop.f32.mrb[8].mxu0 }
  0xea   :  { %v198_v29 = vpop.f32.mrb[9].mxu0 }
  0xeb   :  { %v575_v30 = vpop.f32.mrb[0].mxu1  ;;  %v554_v32 = vpop.f32.mrb[10].mxu0 }
  0xec   :  { %v384_v33 = vadd.f32 %v575_v30, %v549_v24  ;;  %v375_v34 = vpop.f32.mrb[1].mxu1  ;;  %v201_v35 = vpop.f32.mrb[11].mxu0 }
  0xed   :  { %v376_v36 = vadd.f32 %v375_v34, %v182_v25  ;;  %v576_v37 = vpop.f32.mrb[2].mxu1 }
  0xee   :  { %v435_v38 = vadd.f32 %v750_v31, %v384_v33  ;;  %v387_v39 = vadd.f32 %v576_v37, %v550_v26  ;;  %v378_v40 = vpop.f32.mrb[3].mxu1 }
  0xef   :  { %v433_v41 = vadd.f32 %v750_v31, %v376_v36  ;;  %v379_v42 = vadd.f32 %v378_v40, %v185_v27 }
  0xf0   :  { %v451_v43 = vmax.f32 %v435_v38, 0.0  ;;  %v436_v44 = vadd.f32 %v750_v31, %v387_v39 }
  0xf1   :  { %v449_v45 = vmax.f32 %v433_v41, 0.0  ;;  %v434_v46 = vadd.f32 %v750_v31, %v379_v42  ;;  %v557_v47 = vpop.f32.mrb[12].mxu0 }
  0xf2   :  { %467 = vst [vmem:[%s821_s5 + $0x30] sm:$0xff] %v451_v43  ;;  %v452_v48 = vmax.f32 %v436_v44, 0.0  ;;  %v214_v49 = vpop.f32.mrb[13].mxu0 }
  0xf3   :  { %465 = vst [vmem:[%s821_s5 + $0x20] sm:$0xff] %v449_v45  ;;  %v450_v50 = vmax.f32 %v434_v46, 0.0  ;;  %v579_v51 = vpop.f32.mrb[4].mxu1  ;;  %v558_v52 = vpop.f32.mrb[14].mxu0 }
  0xf4   :  { %468 = vst [vmem:[%s821_s5 + $0x38] sm:$0xff] %v452_v48  ;;  %v400_v53 = vadd.f32 %v579_v51, %v553_v28  ;;  %v391_v54 = vpop.f32.mrb[5].mxu1  ;;  %v217_v55 = vpop.f32.mrb[15].mxu0 }
  0xf5   :  { %466 = vst [vmem:[%s821_s5 + $0x28] sm:$0xff] %v450_v50  ;;  %v392_v56 = vadd.f32 %v391_v54, %v198_v29  ;;  %v580_v57 = vpop.f32.mrb[6].mxu1 }
  0xf6   :  { %v439_v58 = vadd.f32 %v750_v31, %v400_v53  ;;  %v403_v59 = vadd.f32 %v580_v57, %v554_v32  ;;  %v394_v60 = vpop.f32.mrb[7].mxu1 }
  0xf7   :  { %v437_v61 = vadd.f32 %v750_v31, %v392_v56  ;;  %v395_v62 = vadd.f32 %v394_v60, %v201_v35 }
  0xf8   :  { %v455_v63 = vmax.f32 %v439_v58, 0.0  ;;  %v440_v0 = vadd.f32 %v750_v31, %v403_v59 }
  0xf9   :  { %v453_v1 = vmax.f32 %v437_v61, 0.0  ;;  %v438_v2 = vadd.f32 %v750_v31, %v395_v62  ;;  %v571_v3 = vpop.f32.mrb[0].mxu0 }
  0xfa   :  { %471 = vst [vmem:[%s821_s5 + $0x50] sm:$0xff] %v455_v63  ;;  %v456_v4 = vmax.f32 %v440_v0, 0.0  ;;  %v431_v5 = vadd.f32 %v571_v3, %v750_v31  ;;  %v359_v6 = vpop.f32.mrb[1].mxu0 }
  0xfb   :  { %469 = vst [vmem:[%s821_s5 + $0x40] sm:$0xff] %v453_v1  ;;  %v454_v7 = vmax.f32 %v438_v2, 0.0  ;;  %v429_v8 = vadd.f32 %v750_v31, %v359_v6  ;;  %v572_v9 = vpop.f32.mrb[2].mxu0  ;;  %v583_v10 = vpop.f32.mrb[8].mxu1 }
  0xfc   :  { %472 = vst [vmem:[%s821_s5 + $0x58] sm:$0xff] %v456_v4  ;;  %v447_v11 = vmax.f32 %v431_v5, 0.0  ;;  %v432_v12 = vadd.f32 %v572_v9, %v750_v31  ;;  %v416_v13 = vadd.f32 %v583_v10, %v557_v47  ;;  %v362_v14 = vpop.f32.mrb[3].mxu0  ;;  %v407_v15 = vpop.f32.mrb[9].mxu1 }
  0xfd   :  { %470 = vst [vmem:[%s821_s5 + $0x48] sm:$0xff] %v454_v7  ;;  %v445_v16 = vmax.f32 %v429_v8, 0.0  ;;  %v430_v17 = vadd.f32 %v750_v31, %v362_v14  ;;  %v408_v18 = vadd.f32 %v407_v15, %v214_v49  ;;  %v584_v19 = vpop.f32.mrb[10].mxu1 }
  0xfe   :  { %463 = vst [vmem:[%s821_s5 + $0x10] sm:$0xff] %v447_v11  ;;  %v448_v20 = vmax.f32 %v432_v12, 0.0  ;;  %v443_v21 = vadd.f32 %v750_v31, %v416_v13  ;;  %v419_v22 = vadd.f32 %v584_v19, %v558_v52  ;;  %v410_v23 = vpop.f32.mrb[11].mxu1 }
  0xff   :  { %461 = vst [vmem:[%s821_s5] sm:$0xff] %v445_v16  ;;  %v446_v24 = vmax.f32 %v430_v17, 0.0  ;;  %v441_v25 = vadd.f32 %v750_v31, %v408_v18  ;;  %v411_v26 = vadd.f32 %v410_v23, %v217_v55 }
 0x100   :  { %464 = vst [vmem:[%s821_s5 + $0x18] sm:$0xff] %v448_v20  ;;  %v459_v27 = vmax.f32 %v443_v21, 0.0  ;;  %v444_v28 = vadd.f32 %v750_v31, %v419_v22 }
 0x101   :  { %462 = vst [vmem:[%s821_s5 + $0x8] sm:$0xff] %v446_v24  ;;  %v457_v29 = vmax.f32 %v441_v25, 0.0  ;;  %v442_v30 = vadd.f32 %v750_v31, %v411_v26 }
 0x102   :  { %475 = vst [vmem:[%s821_s5 + $0x70] sm:$0xff] %v459_v27  ;;  %v460_v32 = vmax.f32 %v444_v28, 0.0 }
 0x103   :  { %473 = vst [vmem:[%s821_s5 + $0x60] sm:$0xff] %v457_v29  ;;  %v458_v33 = vmax.f32 %v442_v30, 0.0 }
 0x104   :  { %476 = vst [vmem:[%s821_s5 + $0x78] sm:$0xff] %v460_v32 }
 0x105   :  { %474 = vst [vmem:[%s821_s5 + $0x68] sm:$0xff] %v458_v33 }

</bundles_post_ra>
